<compile_context>
chip_gen: v5e
topology: v5e:2x2
jax: 0.10.0
libtpu: 0.0.40
codegen_flags: <defaults>
</compile_context>

<pallas_src>
import jax
import jax.numpy as jnp
from jax.experimental import pallas as pl
from jax.experimental.pallas import tpu as pltpu

NEG_SLOPE = 0.01  # nn.LeakyReLU default


def _build_banded_weights(weights, W):
    """[3,3,Cin,Cout] conv weights -> [3, W*Cin, W*Cout] row-banded matrices.

    band[dy] maps one (vertically shifted) input row with channels folded onto
    the lane axis ([W*Cin]) to one output row ([W*Cout]).  Horizontal pad=1 is
    folded in: taps falling outside [0, W) get zero rows in the band.
    """
    _, _, cin, cout = weights.shape
    dx = jnp.arange(3)[:, None, None]          # horizontal tap
    wo = jnp.arange(W)[None, :, None]          # output column
    wi = jnp.arange(W)[None, None, :]          # input column
    sel = (wi == wo + dx - 1).astype(weights.dtype)       # [3, Wout, Win]
    band = jnp.einsum('xop,yxij->ypioj', sel, weights)    # [3, Win, Cin, Wout, Cout]
    return band.reshape(3, W * cin, W * cout)


def _conv3x3_lrelu_kernel(x_ref, w_ref, o_ref):
    """Bt frames per grid step.

    x_ref: [Bt, H+2, W*Cin]    vertically padded frames, channels on lanes
    w_ref: [3, W*Cin, W*Cout]  banded weights (one per vertical tap)
    o_ref: [Bt, H, W*Cout]     lane-dense output
    """
    bt, _, wc = x_ref.shape
    h = o_ref.shape[1]
    wco = o_ref.shape[2]

    x = x_ref[...]
    # dy = 0 seeds the accumulator; dy = 1, 2 accumulate.  Horizontal taps are
    # already inside the banded weight matrices.
    acc = jnp.dot(x[:, 0:h, :].reshape(bt * h, wc), w_ref[0],
                  preferred_element_type=jnp.float32)
    for dy in range(1, 3):
        rows = x[:, dy:dy + h, :].reshape(bt * h, wc)
        acc += jnp.dot(rows, w_ref[dy], preferred_element_type=jnp.float32)
    acc = jnp.where(acc > 0, acc, NEG_SLOPE * acc)         # LeakyReLU, f32 epilogue
    o_ref[...] = acc.reshape(bt, h, wco).astype(o_ref.dtype)


def _pick_block_frames(B, per_frame_bytes, vmem_budget=12 << 20):
    # Aim for >=4 grid blocks (megacore sharding + pipelining) while still
    # batching many frames per step; keep double-buffered blocks under budget.
    bt = max(1, B // 4)
    while bt > 1 and (B % bt or 2 * bt * per_frame_bytes > vmem_budget):
        bt -= 1
    return bt


def conv3x3_lrelu_pallas(x_lanes, w_band, H, W, Cin, Cout):
    """x_lanes: [B, H+2, W*Cin] (vert-padded), w_band: [3, W*Cin, W*Cout]."""
    B = x_lanes.shape[0]
    WC, WCo = W * Cin, W * Cout
    per_frame = ((H + 2) * WC + H * WCo) * x_lanes.dtype.itemsize
    bt = _pick_block_frames(B, per_frame)

    return pl.pallas_call(
        _conv3x3_lrelu_kernel,
        out_shape=jax.ShapeDtypeStruct((B, H, WCo), x_lanes.dtype),
        grid_spec=pltpu.PrefetchScalarGridSpec(
            num_scalar_prefetch=0,
            grid=(B // bt,),
            in_specs=[
                pl.BlockSpec((bt, H + 2, WC), lambda b: (b, 0, 0)),
                pl.BlockSpec((3, WC, WCo), lambda b: (0, 0, 0)),
            ],
            out_specs=pl.BlockSpec((bt, H, WCo), lambda b: (b, 0, 0)),
        ),
        compiler_params=pltpu.CompilerParams(
            dimension_semantics=("parallel",),
            vmem_limit_bytes=64 << 20),
    )(x_lanes, w_band)


def set_block_wrapper_forward(x, weights):
    """SetBlockWrapper.forward with forward_block = Conv2d3x3(bias=False)+LeakyReLU.

    x: [n, c_in, s, h, w]  (PyTorch NCHW + sequence axis)
    weights: [3, 3, c_in, c_out]
    returns: [n, c_out, s, h, w]
    """
    n, c, s, h, w = x.shape
    c_out = weights.shape[-1]
    B = n * s
    # Fold: one transpose [n,c,s,h,w] -> [n,s,h,w,c], then reshape to
    # [B, h, w*c] so channels land on the lane axis.
    x_lanes = jnp.transpose(x, (0, 2, 3, 4, 1)).reshape(B, h, w * c)
    # Vertical-only zero pad (horizontal pad=1 is folded into the banded weights).
    x_lanes = jnp.pad(x_lanes, ((0, 0), (1, 1), (0, 0)))
    w_band = _build_banded_weights(weights, w)             # [3, w*c, w*c_out]
    y = conv3x3_lrelu_pallas(x_lanes, w_band, h, w, c, c_out)  # [B, h, w*c_out]
    # Unfold: [B,h,w*c_out] -> [n,s,h,w,c_out] -> one transpose -> [n,c_out,s,h,w]
    y = y.reshape(n, s, h, w, c_out)
    return jnp.transpose(y, (0, 4, 1, 2, 3))


def _reference(x, weights):
    """Pure-JAX reference (lax conv) with identical wrapper semantics."""
    n, c, s, h, w = x.shape
    xf = jnp.transpose(x, (0, 2, 1, 3, 4)).reshape(n * s, c, h, w)
    w_oihw = jnp.transpose(weights, (3, 2, 0, 1))
    y = jax.lax.conv_general_dilated(
        xf, w_oihw, window_strides=(1, 1), padding=((1, 1), (1, 1)),
        dimension_numbers=("NCHW", "OIHW", "NCHW"))
    y = jnp.where(y > 0, y, NEG_SLOPE * y)
    c_out = y.shape[1]
    y = y.reshape(n, s, c_out, h, w)
    return jnp.transpose(y, (0, 2, 1, 3, 4))


if __name__ == "__main__":
    key = jax.random.PRNGKey(0)
    n, c_in, s, h, w = 2, 4, 8, 16, 16
    c_out = 8

    kx, kw = jax.random.split(key)
    x = jax.random.normal(kx, (n, c_in, s, h, w), dtype=jnp.float32)
    fan_in = c_in * 3 * 3
    weights = jax.random.normal(kw, (3, 3, c_in, c_out), dtype=jnp.float32)
    weights = weights * (2.0 / fan_in) ** 0.5

    out = set_block_wrapper_forward(x, weights)
    out = jax.block_until_ready(out)

    ref = _reference(x, weights)
    assert out.shape == (n, c_out, s, h, w), out.shape
    assert jnp.allclose(out, ref, atol=1e-4, rtol=1e-4), "mismatch vs reference"

    print("KERNEL_OK")
</pallas_src>

<mosaic_0001>
module attributes {stable_mosaic.version = 11 : i64} {
  func.func @_conv3x3_lrelu_kernel(%arg0: i32, %arg1: memref<4x18x64xf32, #tpu.memory_space<vmem>>, %arg2: memref<3x64x128xf32, #tpu.memory_space<vmem>>, %arg3: memref<4x16x128xf32, #tpu.memory_space<vmem>>) attributes {dimension_semantics = [#tpu.dimension_semantics<parallel>], iteration_bounds = array<i64: 4>, scalar_prefetch = 0 : i64, scratch_operands = 0 : i64, tpu.core_type = #tpu.core_type<tc>, window_params = [{transform_indices = @transform_0, window_bounds = array<i64: 4, 18, 64>}, {pipeline_mode = #tpu.pipeline_mode<synchronous>, transform_indices = @transform_1, window_bounds = array<i64: 3, 64, 128>}, {transform_indices = @transform_2, window_bounds = array<i64: 4, 16, 128>}]} {
    %c0 = arith.constant 0 : index
    %c0_0 = arith.constant 0 : index
    %c0_1 = arith.constant 0 : index
    %0 = vector.load %arg1[%c0, %c0_0, %c0_1] : memref<4x18x64xf32, #tpu.memory_space<vmem>>, vector<4x18x64xf32>
    %1 = vector.extract_strided_slice %0 {offsets = [0, 0, 0], sizes = [4, 16, 64], strides = [1, 1, 1]} : vector<4x18x64xf32> to vector<4x16x64xf32>
    %2 = vector.shape_cast %1 : vector<4x16x64xf32> to vector<64x64xf32>
    %c0_2 = arith.constant 0 : index
    %c0_3 = arith.constant 0 : index
    %c0_4 = arith.constant 0 : index
    %3 = vector.load %arg2[%c0_2, %c0_3, %c0_4] : memref<3x64x128xf32, #tpu.memory_space<vmem>>, vector<1x64x128xf32>
    %4 = vector.shape_cast %3 : vector<1x64x128xf32> to vector<64x128xf32>
    %cst = arith.constant dense<0.000000e+00> : vector<64x128xf32>
    %5 = tpu.matmul %2, %4, %cst {dimension_numbers = #tpu.dot_dimension_numbers<[1], [0], [0], [1], [0, 0, 1, 1], [], []>} : vector<64x64xf32>, vector<64x128xf32>, vector<64x128xf32> -> vector<64x128xf32>
    %6 = vector.extract_strided_slice %0 {offsets = [0, 1, 0], sizes = [4, 16, 64], strides = [1, 1, 1]} : vector<4x18x64xf32> to vector<4x16x64xf32>
    %7 = vector.shape_cast %6 : vector<4x16x64xf32> to vector<64x64xf32>
    %c1 = arith.constant 1 : index
    %c0_5 = arith.constant 0 : index
    %c0_6 = arith.constant 0 : index
    %8 = vector.load %arg2[%c1, %c0_5, %c0_6] : memref<3x64x128xf32, #tpu.memory_space<vmem>>, vector<1x64x128xf32>
    %9 = vector.shape_cast %8 : vector<1x64x128xf32> to vector<64x128xf32>
    %cst_7 = arith.constant dense<0.000000e+00> : vector<64x128xf32>
    %10 = tpu.matmul %7, %9, %cst_7 {dimension_numbers = #tpu.dot_dimension_numbers<[1], [0], [0], [1], [0, 0, 1, 1], [], []>} : vector<64x64xf32>, vector<64x128xf32>, vector<64x128xf32> -> vector<64x128xf32>
    %11 = arith.addf %5, %10 : vector<64x128xf32>
    %12 = vector.extract_strided_slice %0 {offsets = [0, 2, 0], sizes = [4, 16, 64], strides = [1, 1, 1]} : vector<4x18x64xf32> to vector<4x16x64xf32>
    %13 = vector.shape_cast %12 : vector<4x16x64xf32> to vector<64x64xf32>
    %c2 = arith.constant 2 : index
    %c0_8 = arith.constant 0 : index
    %c0_9 = arith.constant 0 : index
    %14 = vector.load %arg2[%c2, %c0_8, %c0_9] : memref<3x64x128xf32, #tpu.memory_space<vmem>>, vector<1x64x128xf32>
    %15 = vector.shape_cast %14 : vector<1x64x128xf32> to vector<64x128xf32>
    %cst_10 = arith.constant dense<0.000000e+00> : vector<64x128xf32>
    %16 = tpu.matmul %13, %15, %cst_10 {dimension_numbers = #tpu.dot_dimension_numbers<[1], [0], [0], [1], [0, 0, 1, 1], [], []>} : vector<64x64xf32>, vector<64x128xf32>, vector<64x128xf32> -> vector<64x128xf32>
    %17 = arith.addf %11, %16 : vector<64x128xf32>
    %cst_11 = arith.constant 0.000000e+00 : f32
    %18 = vector.broadcast %cst_11 : f32 to vector<64x128xf32>
    %19 = arith.cmpf ogt, %17, %18 : vector<64x128xf32>
    %cst_12 = arith.constant 0.00999999977 : f32
    %20 = vector.broadcast %cst_12 : f32 to vector<64x128xf32>
    %21 = arith.mulf %20, %17 : vector<64x128xf32>
    %22 = arith.select %19, %17, %21 : vector<64x128xi1>, vector<64x128xf32>
    %23 = vector.shape_cast %22 : vector<64x128xf32> to vector<4x16x128xf32>
    %c0_13 = arith.constant 0 : index
    %c0_14 = arith.constant 0 : index
    %c0_15 = arith.constant 0 : index
    %24 = vector.load %arg3[%c0_13, %c0_14, %c0_15] : memref<4x16x128xf32, #tpu.memory_space<vmem>>, vector<4x16x128xf32>
    tpu.vector_store %arg3[%c0_13, %c0_14, %c0_15], %23 {strides = array<i32>} : memref<4x16x128xf32, #tpu.memory_space<vmem>>, vector<4x16x128xf32>,
    return
  }
  func.func @transform_0(%arg0: i32) -> (i32, i32, i32) {
    %c0_i32 = arith.constant 0 : i32
    %c0_i32_0 = arith.constant 0 : i32
    %c0_i32_1 = arith.constant 0 : i32
    return %arg0, %c0_i32, %c0_i32_0 : i32, i32, i32
  }
  func.func @transform_1(%arg0: i32) -> (i32, i32, i32) {
    %c0_i32 = arith.constant 0 : i32
    %c0_i32_0 = arith.constant 0 : i32
    %c0_i32_1 = arith.constant 0 : i32
    %c0_i32_2 = arith.constant 0 : i32
    return %c0_i32, %c0_i32_0, %c0_i32_1 : i32, i32, i32
  }
  func.func @transform_2(%arg0: i32) -> (i32, i32, i32) {
    %c0_i32 = arith.constant 0 : i32
    %c0_i32_0 = arith.constant 0 : i32
    %c0_i32_1 = arith.constant 0 : i32
    return %arg0, %c0_i32, %c0_i32_0 : i32, i32, i32
  }
}

</mosaic_0001>

<bundles_post_ra>
// kernel: tpu_custom_call.1
= control target key start
LH: loop header
LB: loop body
LE: loop exit
PB: predicated region body
PF: predicated region fallthrough
CT: control target
= control target key end

     0   :  { %7 = vsyncpa [#allocation3], 0  ;;  %s1024_s0 = inlined_call_operand.vmem [shape: f32[16,18,64], index: 0, kind: input, shape index: {}]   ;;  %s1025_s1 = inlined_call_operand.vmem [shape: f32[3,64,128], index: 1, kind: input, shape index: {}]   ;;  %s1026_s2 = inlined_call_operand.hbm [shape: f32[16,16,128], index: 2, kind: output, shape index: {}]  }
   0x1   :  { %9 = vsyncpa [#allocation3 + $0x1], 0  ;;  %s733_s9 = smov 0   ;;  %s735_s10 = smov 0  }
   0x2   :  { %s737_s11 = smov 0   ;;  %s739_s12 = smov 0  }
   0x3 LB: > { %s754_s13 = sadd.s32 4294967295, %s714_s12   ;;  %s531_s14 = sadd.s32 4294967294, %s714_s12   ;;  %s714_s12 = sphi %s739_s12, %s1032_s12   ;;  %s710_s11 = sphi %s737_s11, %s1031_s11   ;;  %s706_s10 = sphi %s735_s10, %s1030_s10   ;;  %s702_s9 = sphi %s733_s9, %s1029_s9  }
   0x4   : > { %s758_s15 = sadd.s32 1, %s714_s12   ;;  %s69_s16 = sadd.s32 1, %s710_s11 }
   0x5   : > { %s66_s17 = ssub.s32 %s714_s12, %s758_s15  ;;  %p79_p0 = scmp.ne.s32.totalorder %s710_s11, %s706_s10 }
   0x6   : > { %p67_p1 = scmp.eq.s32.totalorder %s66_s17, 0  ;;  %p80_p2 = scmp.eq.s32.totalorder %s754_s13, 3 }
   0x7   : > { %p85_p3 = scmp.ne.s32.totalorder %s706_s10, %s702_s9  ;;  %p86_p4 = scmp.eq.s32.totalorder %s531_s14, 3 }
   0x8   : > { %s769_s18 = scalar_select %p67_p1, %s710_s11, %s69_s16  }
   0x9   : > { %p771_p5 = por %p80_p2, %p79_p0  ;;  %p775_p6 = por %p86_p4, %p85_p3 }
   0xa   : > { %p534_p7 = scmp.ge.s32.totalorder %s714_s12, 1  ;;  %p117_p8 = scmp.lt.s32.totalorder %s714_s12, 5 }
   0xc   : > { %p118_p9 = pnand %p534_p7, %p117_p8 }
   0xd   : > { %s536_s27 = sshll.u32 (!%p118_p9), %s754_s13, 2  ;;  %s137_s8 = sand.u32 (!%p118_p9), 1, %s706_s10  }
   0xe   : > { %121 = sbr.rel (%p118_p9) target bundleno = 217 (0xd9), region = 28  ;;  %p141_p10 = scmp.lt.s32.totalorder (!%p118_p9), %s536_s27, 15 }
   0xf   : > { %s535_s14 = sshll.u32 (!%p118_p9), %s137_s8, 6  ;;  %s585_s17 = sshll.u32 (!%p118_p9), %s754_s13, 6 }
  0x10   : > { %s980_s16 = scalar_lea.vmem (!%p118_p9), [#allocation2], %s535_s14  ;;  %s465_s23 = scalar_lea.hbm (!%p118_p9), %s1026_s2, %s585_s17 }
  0x11   : > { %s466_s13 = sshll.u32 (!%p118_p9), %s980_s16, 4  ;;  %s468_s24 = sshll.u32 (!%p118_p9), %s465_s23, 4  ;;  %s467_s13 = int_to_ptr.vmem [resolvable:$true] %s466_s13  ;;  %s469_s24 = int_to_ptr.hbm [resolvable:$true] %s468_s24 }
  0x12   : > { %s453_s25 = scalar_lea.sflag (!%p118_p9), [#allocation3], %s137_s8  ;;  %s666_s26 = sshra.s32 (!%p118_p9), %s469_s24, 4  ;;  %s667_s26 = int_to_ptr.hbm [resolvable:$true] %s666_s26 }
  0x13   : > { %v545_v0 = vld [vmem:[%s1025_s1 + $0x78] sm:$0xff]  ;;  %v544_v2 = vld [vmem:[%s1025_s1 + $0x70] sm:$0xff]  ;;  %v543_v5 = vld [vmem:[%s1025_s1 + $0x68] sm:$0xff]  ;;  %s1034_s27 = smov (!%p141_p10, %s536_s27), 15  ;;  %vm180_vm0 = vcmask 1046528   ;;  %vm325_vm1 = vcmask 1045504   ;;  %p673_p0 = scmp.lt.s32.totalorder %s667_s26, %s1026_s2 }
  0x14   : > { %v787_v1 = vld [vmem:[%s1025_s1 + $0xb8] sm:$0xff]  ;;  %586 = vmatpush.msra.mxu3 %v545_v0  ;;  %v797_v3 = vld [vmem:[%s1025_s1 + $0xb0] sm:$0xff]  ;;  %235 = vmatpush.msra.mxu0 %v545_v0  ;;  %v811_v6 = vld [vmem:[%s1025_s1 + $0xa8] sm:$0xff]  ;;  %s610_s28 = smul.u32 24, %s1034_s27  ;;  %vm210_vm2 = vcmask 523264   ;;  %s672_s3 = scalar_lea.hbm %s1026_s2, 256 }
  0x15   : > { %379 = vmatpush.msra.mxu2 %v787_v1  ;;  %v802_v4 = vld [vmem:[%s1025_s1 + $0x38] sm:$0xff]  ;;  %v816_v7 = vld [vmem:[%s1025_s1 + $0x30] sm:$0xff]  ;;  %v822_v8 = vld [vmem:[%s1025_s1 + $0x28] sm:$0xff] }
  0x16   : > { %292 = vmatpush.msra.mxu1 %v802_v4  ;;  %587 = vmatpush.msra.mxu3 %v544_v2  ;;  %v542_v9 = vld [vmem:[%s1025_s1 + $0x60] sm:$0xff]  ;;  %v541_v12 = vld [vmem:[%s1025_s1 + $0x58] sm:$0xff]  ;;  %v540_v14 = vld [vmem:[%s1025_s1 + $0x50] sm:$0xff]  ;;  %s865_s21 = scalar_lea.vmem %s1024_s0, %s610_s28  ;;  %s668_s28 = scalar_lea.hbm %s667_s26, 64 }
  0x17   : > { %380 = vmatpush.msra.mxu2 %v797_v3  ;;  %236 = vmatpush.msra.mxu0 %v544_v2  ;;  %v831_v10 = vld [vmem:[%s1025_s1 + $0xa0] sm:$0xff]  ;;  %v846_v13 = vld [vmem:[%s1025_s1 + $0x98] sm:$0xff]  ;;  %v855_v15 = vld [vmem:[%s1025_s1 + $0x90] sm:$0xff]  ;;  %p669_p11 = scmp.ne.s32.totalorder %s667_s26, %s668_s28  ;;  %p674_p1 = scmp.lt.s32.totalorder %s672_s3, %s668_s28 }
  0x18   : > { %293 = vmatpush.msra.mxu1 %v816_v7  ;;  %588 = vmatpush.msra.mxu3 %v543_v5  ;;  %v837_v11 = vld [vmem:[%s1025_s1 + $0x20] sm:$0xff]  ;;  %v860_v16 = vld [vmem:[%s1025_s1 + $0x18] sm:$0xff]  ;;  %v869_v17 = vld [vmem:[%s865_s21 + $0x48] sm:$0xff] }
  0x19   : > { %381 = vmatpush.msra.mxu2 %v811_v6  ;;  %237 = vmatpush.msra.mxu0 %v543_v5  ;;  %v872_v18 = vld [vmem:[%s865_s21 + $0x50] sm:$0xff]  ;;  %v148_v19 = vld [vmem:[%s865_s21] sm:$0xff]  ;;  %v196_v21 = vrot.slane %v869_v17, 1  ;;  %v149_v23 = vld [vmem:[%s865_s21 + $0x8] sm:$0xff]  ;;  %v341_v62 = vrot.slane %v869_v17, 2  ;;  %p670_p12 = pnand %p669_p11, %p771_p5  ;;  %p675_p2 = por %p674_p1, %p673_p0 }
  0x1a   : > { %294 = vmatpush.msra.mxu1 %v822_v8  ;;  %589 = vmatpush.msra.mxu3 %v542_v9  ;;  %v162_v20 = vld [vmem:[%s1025_s1 + $0x10] sm:$0xff]  ;;  %v197_v22 = vrot.slane %v872_v18, 1  ;;  %v326_v24 = vrot.slane %v148_v19, 2  ;;  %v539_v25 = vld [vmem:[%s1025_s1 + $0x48] sm:$0xff]  ;;  %v327_v27 = vrot.slane %v149_v23, 2  ;;  %v181_v29 = vrot.slane %v148_v19, 1 }
  0x1b   : > { %382 = vmatpush.msra.mxu2 %v831_v10  ;;  %238 = vmatpush.msra.mxu0 %v542_v9  ;;  %v889_v26 = vld [vmem:[%s1025_s1 + $0x88] sm:$0xff]  ;;  %v182_v30 = vrot.slane %v149_v23, 1  ;;  %v538_v31 = vld [vmem:[%s1025_s1 + $0x40] sm:$0xff]  ;;  %v907_v35 = vld [vmem:[%s865_s21 + $0x58] sm:$0x3]  ;;  %v342_v63 = vrot.slane %v872_v18, 2  ;;  %p671_p13 = pneg %p670_p12 }
  0x1c   : > { %295 = vmatpush.msra.mxu1 %v837_v11  ;;  %590 = vmatpush.msra.mxu3 %v541_v12  ;;  %v161_v28 = vld [vmem:[%s1025_s1 + $0x8] sm:$0xff]  ;;  %v901_v32 = vld [vmem:[%s1025_s1 + $0x80] sm:$0xff]  ;;  %v198_v33 = vsel %vm180_vm0, %v196_v21, %v197_v22  ;;  %v328_v34 = vsel %vm325_vm1, %v326_v24, %v327_v27  ;;  %v150_v36 = vld [vmem:[%s865_s21 + $0x10] sm:$0x3]  ;;  %v199_v39 = vrot.slane %v907_v35, 1 }
  0x1d   : > { %383 = vmatpush.msra.mxu2 %v846_v13  ;;  %239 = vmatpush.msra.mxu0 %v541_v12  ;;  %v160_v37 = vld [vmem:[%s1025_s1] sm:$0xff]  ;;  %v183_v38 = vsel %vm180_vm0, %v181_v29, %v182_v30  ;;  %v329_v40 = vrot.slane %v150_v36, 2  ;;  %v184_v41 = vrot.slane %v150_v36, 1  ;;  %v151_v44 = vld [vmem:[%s865_s21 + $0x18] sm:$0xff]  ;;  %v153_v52 = vld [vmem:[%s865_s21 + $0x28] sm:$0x3]  ;;  %p676_p3 = pnand %p675_p2, %p671_p13 }
  0x1e   : > { %296 = vmatpush.msra.mxu1 %v860_v16  ;;  %591 = vmatpush.msra.mxu3 %v540_v14  ;;  %v200_v42 = vsel %vm180_vm0, %v197_v22, %v199_v39  ;;  %v152_v45 = vld [vmem:[%s865_s21 + $0x20] sm:$0xff]  ;;  %v331_v47 = vrot.slane %v151_v44, 2  ;;  %v186_v49 = vrot.slane %v151_v44, 1  ;;  %v334_v54 = vrot.slane %v153_v52, 2  ;;  %v154_v57 = vld [vmem:[%s865_s21 + $0x30] sm:$0xff]  ;;  %v155_v58 = vld [vmem:[%s865_s21 + $0x38] sm:$0xff] }
  0x1f   : > { %384 = vmatpush.msra.mxu2 %v855_v15  ;;  %240 = vmatpush.msra.mxu0 %v540_v14  ;;  %v330_v43 = vsel %vm325_vm1, %v327_v27, %v329_v40  ;;  %v185_v46 = vsel %vm180_vm0, %v182_v30, %v184_v41  ;;  %v332_v48 = vrot.slane %v152_v45, 2  ;;  %v187_v50 = vrot.slane %v152_v45, 1 }
  0x20   : > { %297 = vmatpush.msra.mxu1 %v162_v20  ;;  %592 = vmatpush.msra.mxu3 %v539_v25  ;;  %v189_v55 = vrot.slane %v153_v52, 1  ;;  %v336_v60 = vrot.slane %v154_v57, 2  ;;  %v337_v61 = vrot.slane %v155_v58, 2  ;;  %v191_v0 = vrot.slane %v154_v57, 1 }
  0x21   : > { %385 = vmatpush.msra.mxu2 %v889_v26  ;;  %241 = vmatpush.msra.mxu0 %v539_v25  ;;  %v333_v51 = vsel %vm325_vm1, %v331_v47, %v332_v48  ;;  %v188_v53 = vsel %vm180_vm0, %v186_v49, %v187_v50  ;;  %v335_v56 = vsel %vm325_vm1, %v332_v48, %v334_v54 }
  0x22   : > { %298 = vmatpush.msra.mxu1 %v161_v28  ;;  %593 = vmatpush.msra.mxu3 %v538_v31  ;;  %v190_v59 = vsel %vm180_vm0, %v187_v50, %v189_v55  ;;  %v338_v2 = vsel %vm325_vm1, %v336_v60, %v337_v61 }
  0x23   : > { %386 = vmatpush.msra.mxu2 %v901_v32  ;;  %552 = vmatmul.msk.f32.vlgmr.msra.gmra.mxu3 %vm210_vm2, %v198_v33 }
  0x24   : > { %570 = vmatmul.msk.f32.vlgmr.msra.gmra.mxu2 %vm210_vm2, %v328_v34  ;;  %594 = vmatpush.msrb.mxu3 %v802_v4  ;;  %v156_v4 = vld [vmem:[%s865_s21 + $0x40] sm:$0x3] }
  0x25   : > { %242 = vmatpush.msra.mxu0 %v538_v31  ;;  %299 = vmatpush.msra.mxu1 %v160_v37 }
  0x26   : > { %546 = vmatmul.msk.f32.vlgmr.msra.gmra.mxu0 %vm210_vm2, %v183_v38  ;;  %595 = vmatpush.msrb.mxu3 %v816_v7  ;;  %v344_v7 = vrot.slane %v907_v35, 2 }
  0x27   : > { %554 = vmatmul.msk.f32.vlgmr.msra.gmra.mxu1 %vm210_vm2, %v148_v19 }
  0x28   : > { %596 = vmatpush.msrb.mxu3 %v822_v8  ;;  %v194_v8 = vrot.slane %v156_v4, 1 }
  0x2a   : > { %597 = vmatpush.msrb.mxu3 %v837_v11 }
  0x2b   : > { %553 = vmatmul.msk.f32.gmra.mxu3 %vm210_vm2, %v200_v42 }
  0x2c   : > { %571 = vmatmul.msk.f32.gmra.mxu2 %vm210_vm2, %v330_v43  ;;  %598 = vmatpush.msrb.mxu3 %v860_v16 }
  0x2e   : > { %547 = vmatmul.msk.f32.gmra.mxu0 %vm210_vm2, %v185_v46  ;;  %599 = vmatpush.msrb.mxu3 %v162_v20 }
  0x2f   : > { %555 = vmatmul.msk.f32.gmra.mxu1 %vm210_vm2, %v149_v23 }
  0x30   : > { %600 = vmatpush.msrb.mxu3 %v161_v28 }
  0x32   : > { %601 = vmatpush.msrb.mxu3 %v160_v37 }
  0x33   : > { %560 = vmatmul.msk.f32.vlgmr.msrb.gmra.mxu3 %vm210_vm2, %v869_v17 }
  0x34   : > { %572 = vmatmul.msk.f32.gmra.mxu2 %vm210_vm2, %v333_v51  ;;  %602 = vmatpush.msra.mxu3 %v787_v1  ;;  %v192_v1 = vrot.slane %v155_v58, 1 }
  0x36   : > { %548 = vmatmul.msk.f32.gmra.mxu0 %vm210_vm2, %v188_v53  ;;  %603 = vmatpush.msra.mxu3 %v797_v3  ;;  %v343_v3 = vsel %vm325_vm1, %v341_v62, %v342_v63  ;;  %v193_v5 = vsel %vm180_vm0, %v191_v0, %v192_v1  ;;  %v195_v11 = vsel %vm180_vm0, %v192_v1, %v194_v8 }
  0x37   : > { %556 = vmatmul.msk.f32.gmra.mxu1 %vm210_vm2, %v151_v44 }
  0x38   : > { %604 = vmatpush.msra.mxu3 %v811_v6  ;;  %v339_v6 = vrot.slane %v156_v4, 2 }
  0x3a   : > { %605 = vmatpush.msra.mxu3 %v831_v10  ;;  %v340_v9 = vsel %vm325_vm1, %v337_v61, %v339_v6  ;;  %v345_v10 = vsel %vm325_vm1, %v342_v63, %v344_v7 }
  0x3b   : > { %561 = vmatmul.msk.f32.gmra.mxu3 %vm210_vm2, %v872_v18 }
  0x3c   : > { %573 = vmatmul.msk.f32.gmra.mxu2 %vm210_vm2, %v335_v56  ;;  %606 = vmatpush.msra.mxu3 %v846_v13 }
  0x3e   : > { %549 = vmatmul.msk.f32.gmra.mxu0 %vm210_vm2, %v190_v59  ;;  %607 = vmatpush.msra.mxu3 %v855_v15 }
  0x3f   : > { %557 = vmatmul.msk.f32.gmra.mxu1 %vm210_vm2, %v152_v45 }
  0x40   : > { %608 = vmatpush.msra.mxu3 %v889_v26 }
  0x42   : > { %609 = vmatpush.msra.mxu3 %v901_v32 }
  0x43   : > { %576 = vmatmul.msk.f32.vlgmr.msra.gmra.mxu3 %vm210_vm2, %v343_v3 }
  0x44   : > { %574 = vmatmul.msk.f32.gmra.mxu2 %vm210_vm2, %v338_v2 }
  0x46   : > { %550 = vmatmul.msk.f32.gmra.mxu0 %vm210_vm2, %v193_v5 }
  0x47   : > { %558 = vmatmul.msk.f32.gmra.mxu1 %vm210_vm2, %v154_v57 }
  0x4b   : > { %577 = vmatmul.msk.f32.gmra.mxu3 %vm210_vm2, %v345_v10 }
  0x4c   : > { %575 = vmatmul.msk.f32.gmra.mxu2 %vm210_vm2, %v340_v9 }
  0x4e   : > { %551 = vmatmul.msk.f32.gmra.mxu0 %vm210_vm2, %v195_v11 }
  0x4f   : > { %559 = vmatmul.msk.f32.gmra.mxu1 %vm210_vm2, %v155_v58 }
  0xa3   : > { %v244_v12 = vpop.f32.mrf.mxu0 }
  0xa4   : > { %v301_v13 = vpop.f32.mrf.mxu1 }
  0xa5   : > { %v302_v14 = vadd.f32 %v301_v13, %v244_v12 }
  0xa6   : > { %v262_v15 = vpop.f32.mrf.mxu3 }
  0xa7   : > { %v388_v16 = vpop.f32.mrf.mxu2 }
  0xa8   : > { %v412_v17 = vadd.f32 %v388_v16, %v302_v14 }
  0xaa   : > { %vm420_vm3 = vcmp.gt.f32.partialorder %v412_v17, 0.0  ;;  %v428_v18 = vmul.f32 0.01, %v412_v17 }
  0xab   : > { %v247_v19 = vpop.f32.mrf.mxu0 }
  0xac   : > { %v436_v20 = vsel %vm420_vm3, %v412_v17, %v428_v18  ;;  %v304_v21 = vpop.f32.mrf.mxu1 }
  0xad   : > { %444 = vst [vmem:[%s980_s16] sm:$0xff] %v436_v20  ;;  %v305_v22 = vadd.f32 %v304_v21, %v247_v19 }
  0xae   : > { %v265_v23 = vpop.f32.mrf.mxu3 }
  0xaf   : > { %v391_v24 = vpop.f32.mrf.mxu2 }
  0xb0   : > { %v413_v25 = vadd.f32 %v391_v24, %v305_v22 }
  0xb2   : > { %vm421_vm4 = vcmp.gt.f32.partialorder %v413_v25, 0.0  ;;  %v429_v26 = vmul.f32 0.01, %v413_v25 }
  0xb3   : > { %v250_v27 = vpop.f32.mrf.mxu0 }
  0xb4   : > { %v437_v28 = vsel %vm421_vm4, %v413_v25, %v429_v26  ;;  %v307_v29 = vpop.f32.mrf.mxu1 }
  0xb5   : > { %445 = vst [vmem:[%s980_s16 + $0x8] sm:$0xff] %v437_v28  ;;  %v308_v30 = vadd.f32 %v307_v29, %v250_v27 }
  0xb6   : > { %v319_v31 = vpop.f32.mrf.mxu3 }
  0xb7   : > { %v394_v32 = vpop.f32.mrf.mxu2  ;;  %v320_v47 = vadd.f32 %v319_v31, %v262_v15 }
  0xb8   : > { %v414_v33 = vadd.f32 %v394_v32, %v308_v30 }
  0xba   : > { %vm422_vm5 = vcmp.gt.f32.partialorder %v414_v33, 0.0  ;;  %v430_v34 = vmul.f32 0.01, %v414_v33 }
  0xbb   : > { %v253_v35 = vpop.f32.mrf.mxu0 }
  0xbc   : > { %v438_v36 = vsel %vm422_vm5, %v414_v33, %v430_v34  ;;  %v310_v37 = vpop.f32.mrf.mxu1 }
  0xbd   : > { %446 = vst [vmem:[%s980_s16 + $0x10] sm:$0xff] %v438_v36  ;;  %v311_v38 = vadd.f32 %v310_v37, %v253_v35 }
  0xbe   : > { %v322_v39 = vpop.f32.mrf.mxu3 }
  0xbf   : > { %v397_v40 = vpop.f32.mrf.mxu2  ;;  %v323_v59 = vadd.f32 %v322_v39, %v265_v23 }
  0xc0   : > { %v415_v41 = vadd.f32 %v397_v40, %v311_v38 }
  0xc2   : > { %vm423_vm6 = vcmp.gt.f32.partialorder %v415_v41, 0.0  ;;  %v431_v42 = vmul.f32 0.01, %v415_v41 }
  0xc3   : > { %v256_v43 = vpop.f32.mrf.mxu0 }
  0xc4   : > { %v439_v44 = vsel %vm423_vm6, %v415_v41, %v431_v42  ;;  %v313_v45 = vpop.f32.mrf.mxu1 }
  0xc5   : > { %447 = vst [vmem:[%s980_s16 + $0x18] sm:$0xff] %v439_v44  ;;  %v314_v46 = vadd.f32 %v313_v45, %v256_v43 }
  0xc6   : > { %v406_v49 = vpop.f32.mrf.mxu3 }
  0xc7   : > { %v400_v48 = vpop.f32.mrf.mxu2  ;;  %v418_v51 = vadd.f32 %v406_v49, %v320_v47 }
  0xc8   : > { %v416_v50 = vadd.f32 %v400_v48, %v314_v46 }
  0xc9   : > { %vm426_vm8 = vcmp.gt.f32.partialorder %v418_v51, 0.0  ;;  %v434_v53 = vmul.f32 0.01, %v418_v51 }
  0xca   : > { %vm424_vm7 = vcmp.gt.f32.partialorder %v416_v50, 0.0  ;;  %v432_v52 = vmul.f32 0.01, %v416_v50 }
  0xcb   : > { %v259_v54 = vpop.f32.mrf.mxu0  ;;  %v442_v56 = vsel %vm426_vm8, %v418_v51, %v434_v53 }
  0xcc   : > { %v440_v55 = vsel %vm424_vm7, %v416_v50, %v432_v52  ;;  %v316_v57 = vpop.f32.mrf.mxu1  ;;  %450 = vst [vmem:[%s980_s16 + $0x30] sm:$0xff] %v442_v56 }
  0xcd   : > { %448 = vst [vmem:[%s980_s16 + $0x20] sm:$0xff] %v440_v55  ;;  %v317_v58 = vadd.f32 %v316_v57, %v259_v54 }
  0xce   : > { %v409_v61 = vpop.f32.mrf.mxu3 }
  0xcf   : > { %v403_v60 = vpop.f32.mrf.mxu2  ;;  %v419_v63 = vadd.f32 %v409_v61, %v323_v59 }
  0xd0   : > { %v417_v62 = vadd.f32 %v403_v60, %v317_v58 }
  0xd1   : > { %vm427_vm10 = vcmp.gt.f32.partialorder %v419_v63, 0.0  ;;  %v435_v1 = vmul.f32 0.01, %v419_v63 }
  0xd2   : > { %vm425_vm9 = vcmp.gt.f32.partialorder %v417_v62, 0.0  ;;  %v433_v0 = vmul.f32 0.01, %v417_v62 }
  0xd3   : > { %v443_v3 = vsel %vm427_vm10, %v419_v63, %v435_v1 }
  0xd4   : > { %v441_v2 = vsel %vm425_vm9, %v417_v62, %v433_v0  ;;  %451 = vst [vmem:[%s980_s16 + $0x38] sm:$0xff] %v443_v3 }
  0xd5   : > { %449 = vst [vmem:[%s980_s16 + $0x28] sm:$0xff] %v441_v2 }
  0xd6   : > { %679 = shalt.err (!%p676_p3)
}
  0xd7   : > { %s716_s6 = smov 128   ;;  %s717_s27 = smov 8  }
  0xd8   : > { %611 = dma.vmem_to_hbm [thread:$0]  (%p771_p5), %s467_s13, 1024, %s469_s24, %s453_s25, %s716_s6, %s716_s6, %s717_s27  }
  0xd9 PF: > { %p617_p4 = scmp.ge.s32.totalorder %s714_s12, 2  ;;  %s483_s7 = sand.u32 1, %s702_s9  }
  0xda   : > { %s484_s8 = scalar_lea.sflag [#allocation3], %s483_s7 }
  0xdb   : > { %p614_p7 = pnand %p617_p4, %p775_p6 }
  0xdd   : > { %p615_p8 = pneg %p614_p7 }
  0xdf   : > { %697 = dma.done.wait (%p615_p8), %s484_s8, 1024  }
  0xe0   : > { %699 = vsyncadd (%p615_p8), %s484_s8, 4294966272  ;;  %p12_p9 = scmp.ge.s32.totalorder %s758_s15, 6   ;;  %s1029_s9 = smov %s706_s10 }
  0xe1   : > { %s1030_s10 = smov %s710_s11  ;;  %s1031_s11 = smov %s769_s18 }
  0xe2   : > { %s1032_s12 = smov %s758_s15  ;;  %14 = sbr.rel (!%p12_p9) target bundleno = 3 (0x3), region = 65 }
  0xe7   :  { %490 = vsyncpa [#allocation3], 1 }
  0xe8   :  { %492 = vsyncpa [#allocation3 + $0x1], 1 }

</bundles_post_ra>
